<compile_context>
chip_gen: v7x
topology: tpu7x:2x2x1
jax: 0.10.0
libtpu: 0.0.40
codegen_flags: <defaults>
</compile_context>

<pallas_src>
import jax
import jax.numpy as jnp
from jax.experimental import pallas as pl
from jax.experimental.pallas import tpu as pltpu


def fnn_kernel(x_ref, w1_ref, b1_ref, w2_ref, b2_ref, w3_ref, b3_ref,
               wo_ref, bo_ref, o_ref):
    """All four layers fused on one batch tile (MXU matmuls, VPU bias+ReLU)."""
    x = x_ref[...]                                                     # [action_dim, tile_b]
    h = jnp.dot(w1_ref[...], x, preferred_element_type=jnp.float32) + b1_ref[...]
    h = jnp.maximum(h, 0.0)                                            # [h1, tile_b]
    h = jnp.dot(w2_ref[...], h, preferred_element_type=jnp.float32) + b2_ref[...]
    h = jnp.maximum(h, 0.0)                                            # [h2, tile_b]
    h = jnp.dot(w3_ref[...], h, preferred_element_type=jnp.float32) + b3_ref[...]
    h = jnp.maximum(h, 0.0)                                            # [h1, tile_b]
    o = jnp.dot(wo_ref[...], h, preferred_element_type=jnp.float32) + bo_ref[...]
    o_ref[...] = o.astype(o_ref.dtype)                                 # lane-dense store


def _choose_tile_b(batch):
    """Batch sits on the lane axis, so a non-full tile must be a multiple of 128.
    For batches >= 256 prefer >= 2 grid steps (pipeline overlap + v7x megacore)
    and cap the tile at 512 so the fused activations stay tiny in VMEM
    (well under the 16 MiB v5e scoped default, 32 MiB v6e/v7x)."""
    if batch < 256:
        return batch                       # single full-dim block; always legal
    tile = min(512, (batch // 2) // 128 * 128)
    return max(tile, 128)


def fnn_forward(x, params, *, tile_b=None):
    """x: [B, action_dim] float32.
    params: dict name -> (w, b) with w in PyTorch layout [out, in], b as [out, 1]."""
    B, action_dim = x.shape
    w1, b1 = params["fc1"]
    w2, b2 = params["fc2"]
    w3, b3 = params["fc3"]
    wo, bo = params["out"]
    out_dim = wo.shape[0]

    if tile_b is None:
        tile_b = _choose_tile_b(B)
    if tile_b != B and tile_b % 128 != 0:
        raise ValueError("tile_b must equal the batch or be a multiple of 128 "
                         "(batch is on the lane axis)")

    # Pad batch up to a multiple of tile_b with zero columns (they flow through
    # the ReLU-MLP harmlessly and are sliced off afterwards).
    num_tiles = (B + tile_b - 1) // tile_b
    Bp = num_tiles * tile_b
    xt = x.T                                                           # [action_dim, B]
    if Bp != B:
        xt = jnp.pad(xt, ((0, 0), (0, Bp - B)))

    # Loop-invariant operands (weights/biases): constant index_map, so the
    # pipeline never re-DMAs them; total footprint is a few tens of KiB so the
    # extra pipeline buffer is negligible VMEM.
    full = lambda a: pl.BlockSpec(a.shape, lambda i: (0, 0))

    h1, h2 = w1.shape[0], w2.shape[0]
    flops = 2 * Bp * (action_dim * h1 + h1 * h2 + h2 * h1 + h1 * out_dim)
    weight_bytes = sum(int(a.size) * a.dtype.itemsize
                       for a in (w1, b1, w2, b2, w3, b3, wo, bo))
    bytes_accessed = Bp * (action_dim + out_dim) * 4 + weight_bytes

    out_t = pl.pallas_call(
        fnn_kernel,
        out_shape=jax.ShapeDtypeStruct((out_dim, Bp), x.dtype),
        grid_spec=pltpu.PrefetchScalarGridSpec(
            num_scalar_prefetch=0,
            grid=(num_tiles,),
            in_specs=[
                pl.BlockSpec((action_dim, tile_b), lambda i: (0, i)),  # x^T tile
                full(w1), full(b1),
                full(w2), full(b2),
                full(w3), full(b3),
                full(wo), full(bo),
            ],
            out_specs=pl.BlockSpec((out_dim, tile_b), lambda i: (0, i)),
        ),
        compiler_params=pltpu.CompilerParams(
            dimension_semantics=("parallel",),       # batch tiles shard across v7x cores
        ),
        cost_estimate=pl.CostEstimate(flops=flops, transcendentals=0,
                                      bytes_accessed=bytes_accessed),
    )(xt, w1, b1, w2, b2, w3, b3, wo, bo)

    return out_t[:, :B].T                                              # [B, out_dim]


def init_fnn_params(key, action_dim, hidden_dim1, hidden_dim2, output_dim):
    """Mirror the PyTorch module: weights ~ Normal(0, 0.1) in [out, in] layout,
    biases ~ Uniform(-1/sqrt(fan_in), 1/sqrt(fan_in)) stored as [out, 1]."""
    dims = [
        ("fc1", action_dim, hidden_dim1),
        ("fc2", hidden_dim1, hidden_dim2),
        ("fc3", hidden_dim2, hidden_dim1),
        ("out", hidden_dim1, output_dim),
    ]
    params = {}
    keys = jax.random.split(key, 2 * len(dims))
    for idx, (name, fan_in, fan_out) in enumerate(dims):
        wk, bk = keys[2 * idx], keys[2 * idx + 1]
        w = 0.1 * jax.random.normal(wk, (fan_out, fan_in), dtype=jnp.float32)
        bound = 1.0 / jnp.sqrt(jnp.float32(fan_in))
        b = jax.random.uniform(bk, (fan_out, 1), dtype=jnp.float32,
                               minval=-bound, maxval=bound)
        params[name] = (w, b)
    return params


def fnn_reference(x, params):
    w1, b1 = params["fc1"]
    w2, b2 = params["fc2"]
    w3, b3 = params["fc3"]
    wo, bo = params["out"]
    h = jax.nn.relu(x @ w1.T + b1.T)
    h = jax.nn.relu(h @ w2.T + b2.T)
    h = jax.nn.relu(h @ w3.T + b3.T)
    return h @ wo.T + bo.T


if __name__ == "__main__":
    key = jax.random.PRNGKey(0)
    k_param, k_x1, k_x2 = jax.random.split(key, 3)

    # Small shapes consistent with the module's forward: s is [batch, action_dim].
    action_dim, hidden_dim1, hidden_dim2, output_dim = 16, 32, 64, 16
    params = init_fnn_params(k_param, action_dim, hidden_dim1, hidden_dim2, output_dim)

    # Case 1: tiny batch (single full-dim block).
    x_small = jax.random.normal(k_x1, (8, action_dim), dtype=jnp.float32)
    out_small = jax.block_until_ready(fnn_forward(x_small, params))
    ref_small = fnn_reference(x_small, params)
    assert out_small.shape == (8, output_dim)
    assert jnp.allclose(out_small, ref_small, atol=1e-4, rtol=1e-4)

    # Case 2: multi-tile batch (exercises 128-lane tiles, padding and the
    # "parallel" pipelined grid path).
    x_big = jax.random.normal(k_x2, (300, action_dim), dtype=jnp.float32)
    out_big = jax.block_until_ready(fnn_forward(x_big, params))
    ref_big = fnn_reference(x_big, params)
    assert out_big.shape == (300, output_dim)
    assert jnp.allclose(out_big, ref_big, atol=1e-4, rtol=1e-4)

    print("KERNEL_OK")
</pallas_src>

<mosaic_0001>
module attributes {stable_mosaic.version = 11 : i64} {
  func.func @fnn_kernel(%arg0: i32, %arg1: memref<16x8xf32, #tpu.memory_space<vmem>>, %arg2: memref<32x16xf32, #tpu.memory_space<vmem>>, %arg3: memref<32x1xf32, #tpu.memory_space<vmem>>, %arg4: memref<64x32xf32, #tpu.memory_space<vmem>>, %arg5: memref<64x1xf32, #tpu.memory_space<vmem>>, %arg6: memref<32x64xf32, #tpu.memory_space<vmem>>, %arg7: memref<32x1xf32, #tpu.memory_space<vmem>>, %arg8: memref<16x32xf32, #tpu.memory_space<vmem>>, %arg9: memref<16x1xf32, #tpu.memory_space<vmem>>, %arg10: memref<16x8xf32, #tpu.memory_space<vmem>>) attributes {dimension_semantics = [#tpu.dimension_semantics<parallel>], iteration_bounds = array<i64: 1>, scalar_prefetch = 0 : i64, scratch_operands = 0 : i64, tpu.core_type = #tpu.core_type<tc>, window_params = [{transform_indices = @transform_0, window_bounds = array<i64: 16, 8>}, {pipeline_mode = #tpu.pipeline_mode<synchronous>, transform_indices = @transform_1, window_bounds = array<i64: 32, 16>}, {pipeline_mode = #tpu.pipeline_mode<synchronous>, transform_indices = @transform_2, window_bounds = array<i64: 32, 1>}, {pipeline_mode = #tpu.pipeline_mode<synchronous>, transform_indices = @transform_3, window_bounds = array<i64: 64, 32>}, {pipeline_mode = #tpu.pipeline_mode<synchronous>, transform_indices = @transform_4, window_bounds = array<i64: 64, 1>}, {pipeline_mode = #tpu.pipeline_mode<synchronous>, transform_indices = @transform_5, window_bounds = array<i64: 32, 64>}, {pipeline_mode = #tpu.pipeline_mode<synchronous>, transform_indices = @transform_6, window_bounds = array<i64: 32, 1>}, {pipeline_mode = #tpu.pipeline_mode<synchronous>, transform_indices = @transform_7, window_bounds = array<i64: 16, 32>}, {pipeline_mode = #tpu.pipeline_mode<synchronous>, transform_indices = @transform_8, window_bounds = array<i64: 16, 1>}, {transform_indices = @transform_9, window_bounds = array<i64: 16, 8>}]} {
    %c0 = arith.constant 0 : index
    %c0_0 = arith.constant 0 : index
    %0 = vector.load %arg1[%c0, %c0_0] : memref<16x8xf32, #tpu.memory_space<vmem>>, vector<16x8xf32>
    %c0_1 = arith.constant 0 : index
    %c0_2 = arith.constant 0 : index
    %1 = vector.load %arg2[%c0_1, %c0_2] : memref<32x16xf32, #tpu.memory_space<vmem>>, vector<32x16xf32>
    %cst = arith.constant dense<0.000000e+00> : vector<32x8xf32>
    %2 = tpu.matmul %1, %0, %cst {dimension_numbers = #tpu.dot_dimension_numbers<[1], [0], [0], [1], [0, 0, 1, 1], [], []>} : vector<32x16xf32>, vector<16x8xf32>, vector<32x8xf32> -> vector<32x8xf32>
    %c0_3 = arith.constant 0 : index
    %c0_4 = arith.constant 0 : index
    %3 = vector.load %arg3[%c0_3, %c0_4] : memref<32x1xf32, #tpu.memory_space<vmem>>, vector<32x1xf32>
    %4 = vector.broadcast %3 : vector<32x1xf32> to vector<32x8xf32>
    %5 = arith.addf %2, %4 : vector<32x8xf32>
    %cst_5 = arith.constant 0.000000e+00 : f32
    %6 = vector.broadcast %cst_5 : f32 to vector<32x8xf32>
    %7 = arith.maximumf %5, %6 : vector<32x8xf32>
    %c0_6 = arith.constant 0 : index
    %c0_7 = arith.constant 0 : index
    %8 = vector.load %arg4[%c0_6, %c0_7] : memref<64x32xf32, #tpu.memory_space<vmem>>, vector<64x32xf32>
    %cst_8 = arith.constant dense<0.000000e+00> : vector<64x8xf32>
    %9 = tpu.matmul %8, %7, %cst_8 {dimension_numbers = #tpu.dot_dimension_numbers<[1], [0], [0], [1], [0, 0, 1, 1], [], []>} : vector<64x32xf32>, vector<32x8xf32>, vector<64x8xf32> -> vector<64x8xf32>
    %c0_9 = arith.constant 0 : index
    %c0_10 = arith.constant 0 : index
    %10 = vector.load %arg5[%c0_9, %c0_10] : memref<64x1xf32, #tpu.memory_space<vmem>>, vector<64x1xf32>
    %11 = vector.broadcast %10 : vector<64x1xf32> to vector<64x8xf32>
    %12 = arith.addf %9, %11 : vector<64x8xf32>
    %cst_11 = arith.constant 0.000000e+00 : f32
    %13 = vector.broadcast %cst_11 : f32 to vector<64x8xf32>
    %14 = arith.maximumf %12, %13 : vector<64x8xf32>
    %c0_12 = arith.constant 0 : index
    %c0_13 = arith.constant 0 : index
    %15 = vector.load %arg6[%c0_12, %c0_13] : memref<32x64xf32, #tpu.memory_space<vmem>>, vector<32x64xf32>
    %cst_14 = arith.constant dense<0.000000e+00> : vector<32x8xf32>
    %16 = tpu.matmul %15, %14, %cst_14 {dimension_numbers = #tpu.dot_dimension_numbers<[1], [0], [0], [1], [0, 0, 1, 1], [], []>} : vector<32x64xf32>, vector<64x8xf32>, vector<32x8xf32> -> vector<32x8xf32>
    %c0_15 = arith.constant 0 : index
    %c0_16 = arith.constant 0 : index
    %17 = vector.load %arg7[%c0_15, %c0_16] : memref<32x1xf32, #tpu.memory_space<vmem>>, vector<32x1xf32>
    %18 = vector.broadcast %17 : vector<32x1xf32> to vector<32x8xf32>
    %19 = arith.addf %16, %18 : vector<32x8xf32>
    %cst_17 = arith.constant 0.000000e+00 : f32
    %20 = vector.broadcast %cst_17 : f32 to vector<32x8xf32>
    %21 = arith.maximumf %19, %20 : vector<32x8xf32>
    %c0_18 = arith.constant 0 : index
    %c0_19 = arith.constant 0 : index
    %22 = vector.load %arg8[%c0_18, %c0_19] : memref<16x32xf32, #tpu.memory_space<vmem>>, vector<16x32xf32>
    %cst_20 = arith.constant dense<0.000000e+00> : vector<16x8xf32>
    %23 = tpu.matmul %22, %21, %cst_20 {dimension_numbers = #tpu.dot_dimension_numbers<[1], [0], [0], [1], [0, 0, 1, 1], [], []>} : vector<16x32xf32>, vector<32x8xf32>, vector<16x8xf32> -> vector<16x8xf32>
    %c0_21 = arith.constant 0 : index
    %c0_22 = arith.constant 0 : index
    %24 = vector.load %arg9[%c0_21, %c0_22] : memref<16x1xf32, #tpu.memory_space<vmem>>, vector<16x1xf32>
    %25 = vector.broadcast %24 : vector<16x1xf32> to vector<16x8xf32>
    %26 = arith.addf %23, %25 : vector<16x8xf32>
    %c0_23 = arith.constant 0 : index
    %c0_24 = arith.constant 0 : index
    %27 = vector.load %arg10[%c0_23, %c0_24] : memref<16x8xf32, #tpu.memory_space<vmem>>, vector<16x8xf32>
    tpu.vector_store %arg10[%c0_23, %c0_24], %26 {strides = array<i32>} : memref<16x8xf32, #tpu.memory_space<vmem>>, vector<16x8xf32>,
    return
  }
  func.func @transform_0(%arg0: i32) -> (i32, i32) {
    %c0_i32 = arith.constant 0 : i32
    %c0_i32_0 = arith.constant 0 : i32
    return %c0_i32, %arg0 : i32, i32
  }
  func.func @transform_1(%arg0: i32) -> (i32, i32) {
    %c0_i32 = arith.constant 0 : i32
    %c0_i32_0 = arith.constant 0 : i32
    %c0_i32_1 = arith.constant 0 : i32
    return %c0_i32, %c0_i32_0 : i32, i32
  }
  func.func @transform_2(%arg0: i32) -> (i32, i32) {
    %c0_i32 = arith.constant 0 : i32
    %c0_i32_0 = arith.constant 0 : i32
    %c0_i32_1 = arith.constant 0 : i32
    return %c0_i32, %c0_i32_0 : i32, i32
  }
  func.func @transform_3(%arg0: i32) -> (i32, i32) {
    %c0_i32 = arith.constant 0 : i32
    %c0_i32_0 = arith.constant 0 : i32
    %c0_i32_1 = arith.constant 0 : i32
    return %c0_i32, %c0_i32_0 : i32, i32
  }
  func.func @transform_4(%arg0: i32) -> (i32, i32) {
    %c0_i32 = arith.constant 0 : i32
    %c0_i32_0 = arith.constant 0 : i32
    %c0_i32_1 = arith.constant 0 : i32
    return %c0_i32, %c0_i32_0 : i32, i32
  }
  func.func @transform_5(%arg0: i32) -> (i32, i32) {
    %c0_i32 = arith.constant 0 : i32
    %c0_i32_0 = arith.constant 0 : i32
    %c0_i32_1 = arith.constant 0 : i32
    return %c0_i32, %c0_i32_0 : i32, i32
  }
  func.func @transform_6(%arg0: i32) -> (i32, i32) {
    %c0_i32 = arith.constant 0 : i32
    %c0_i32_0 = arith.constant 0 : i32
    %c0_i32_1 = arith.constant 0 : i32
    return %c0_i32, %c0_i32_0 : i32, i32
  }
  func.func @transform_7(%arg0: i32) -> (i32, i32) {
    %c0_i32 = arith.constant 0 : i32
    %c0_i32_0 = arith.constant 0 : i32
    %c0_i32_1 = arith.constant 0 : i32
    return %c0_i32, %c0_i32_0 : i32, i32
  }
  func.func @transform_8(%arg0: i32) -> (i32, i32) {
    %c0_i32 = arith.constant 0 : i32
    %c0_i32_0 = arith.constant 0 : i32
    %c0_i32_1 = arith.constant 0 : i32
    return %c0_i32, %c0_i32_0 : i32, i32
  }
  func.func @transform_9(%arg0: i32) -> (i32, i32) {
    %c0_i32 = arith.constant 0 : i32
    %c0_i32_0 = arith.constant 0 : i32
    return %c0_i32, %arg0 : i32, i32
  }
}

</mosaic_0001>

<bundles_post_ra>
// kernel: tpu_custom_call.1
= control target key start
LH: loop header
LB: loop body
LE: loop exit
PB: predicated region body
PF: predicated region fallthrough
CT: control target
= control target key end

     0   :  { %vm62_vm0 = vcmask 130048   ;;  %v746_v3 = vmov 0   ;;  %vm220_vm1 = vcmask 261120   ;;  %vm386_vm2 = vcmask 523264   ;;  %s935_s0 = inlined_call_operand.vmem [shape: f32[16,8], index: 0, kind: input, shape index: {}]   ;;  %s936_s1 = inlined_call_operand.vmem [shape: f32[32,16], index: 1, kind: input, shape index: {}]   ;;  %s937_s2 = inlined_call_operand.vmem [shape: f32[32,1], index: 2, kind: input, shape index: {}]   ;;  %s938_s4 = inlined_call_operand.vmem [shape: f32[64,1], index: 4, kind: input, shape index: {}]   ;;  %s939_s6 = inlined_call_operand.vmem [shape: f32[32,1], index: 6, kind: input, shape index: {}]   ;;  %s940_s8 = inlined_call_operand.vmem [shape: f32[16,1], index: 8, kind: input, shape index: {}]   ;;  %s941_s3 = inlined_call_operand.vmem [shape: f32[64,32], index: 3, kind: input, shape index: {}]   ;;  %s942_s5 = inlined_call_operand.vmem [shape: f32[32,64], index: 5, kind: input, shape index: {}]   ;;  %s943_s7 = inlined_call_operand.vmem [shape: f32[16,32], index: 7, kind: input, shape index: {}]   ;;  %s944_s9 = inlined_call_operand.vmem [shape: f32[16,8], index: 9, kind: output, shape index: {}]  }
   0x1   :  { %v32_v0 = vld [vmem:[%s935_s0] sm:$0xff]  ;;  %v33_v1 = vld [vmem:[%s935_s0 + $0x8] sm:$0xff]  ;;  %744 = vset.pattern.permute.xlu0 %v746_v3  ;;  %745 = vset.pattern.permute.xlu1 %v746_v3  ;;  %v40_v6 = vld [vmem:[%s937_s2 + $0x10] sm:$0xff]  ;;  %vm583_vm3 = vcmask 64512  }
   0x2   :  { %v34_v2 = vld [vmem:[%s936_s1] sm:$0xff]  ;;  %v707_v4 = vpack.c.bf16 %v33_v1, %v32_v0  ;;  %v35_v7 = vld [vmem:[%s936_s1 + $0x8] sm:$0xff]  ;;  %54 = vperm.xlu1 %745, %v40_v6   ;;  %v36_v9 = vld [vmem:[%s936_s1 + $0x10] sm:$0xff] }
   0x3   :  { %648 = vmatprep.mubr.msk.f32.mxu0 %vm62_vm0, %v34_v2  ;;  %v38_v5 = vld [vmem:[%s937_s2] sm:$0xff]  ;;  %v39_v8 = vld [vmem:[%s937_s2 + $0x8] sm:$0xff]  ;;  %v41_v10 = vld [vmem:[%s937_s2 + $0x18] sm:$0xff] }
   0x4   :  { %708 = vmatprep.subr.bf16.mxu0 %v707_v4  ;;  %44 = vperm.xlu0 %744, %v38_v5   ;;  %v37_v11 = vld [vmem:[%s936_s1 + $0x18] sm:$0xff]  ;;  %v172_v12 = vld [vmem:[%s938_s4] sm:$0xff]  ;;  %v173_v13 = vld [vmem:[%s938_s4 + $0x8] sm:$0xff] }
   0x5   :  { %710 = vmatpush3.bf16.msra.mxu0 %v707_v4  ;;  %v174_v14 = vld [vmem:[%s938_s4 + $0x10] sm:$0xff]  ;;  %v175_v15 = vld [vmem:[%s938_s4 + $0x18] sm:$0xff]  ;;  %v176_v16 = vld [vmem:[%s938_s4 + $0x20] sm:$0xff] }
   0x6   :  { %59 = vperm.xlu1 %745, %v41_v10   ;;  %v177_v17 = vld [vmem:[%s938_s4 + $0x28] sm:$0xff]  ;;  %v178_v18 = vld [vmem:[%s938_s4 + $0x30] sm:$0xff]  ;;  %v179_v19 = vld [vmem:[%s938_s4 + $0x38] sm:$0xff] }
   0x7   :  { %v362_v20 = vld [vmem:[%s939_s6] sm:$0xff]  ;;  %v363_v21 = vld [vmem:[%s939_s6 + $0x8] sm:$0xff]  ;;  %v364_v22 = vld [vmem:[%s939_s6 + $0x10] sm:$0xff] }
   0x8   :  { %649 = vmatmul.mubr.msk.f32.vlgmr.msra.gmra.mrb[0].mxu0 %vm62_vm0, %v35_v7  ;;  %49 = vperm.xlu0 %744, %v39_v8   ;;  %v365_v23 = vld [vmem:[%s939_s6 + $0x18] sm:$0xff]  ;;  %v490_v24 = vld [vmem:[%s940_s8] sm:$0xff]  ;;  %v491_v25 = vld [vmem:[%s940_s8 + $0x8] sm:$0xff] }
   0x9   :  { %651 = vmatprep.mubr.msk.f32.mxu0 %vm62_vm0, %v36_v9  ;;  %v164_v26 = vld [vmem:[%s941_s3] sm:$0xff]  ;;  %v165_v45 = vld [vmem:[%s941_s3 + $0x8] sm:$0xff]  ;;  %v166_v46 = vld [vmem:[%s941_s3 + $0x10] sm:$0xff] }
   0xa   :  { %187 = vperm.xlu1 %745, %v173_v13   ;;  %662 = vmatprep.mubr.msk.f32.mxu1 %vm220_vm1, %v164_v26  ;;  %v167_v47 = vld [vmem:[%s941_s3 + $0x18] sm:$0xff]  ;;  %v168_v48 = vld [vmem:[%s941_s3 + $0x20] sm:$0xff]  ;;  %v169_v49 = vld [vmem:[%s941_s3 + $0x28] sm:$0xff] }
   0xb   :  { %v170_v50 = vld [vmem:[%s941_s3 + $0x30] sm:$0xff]  ;;  %v171_v51 = vld [vmem:[%s941_s3 + $0x38] sm:$0xff]  ;;  %v358_v52 = vld [vmem:[%s942_s5] sm:$0xff] }
   0xc   :  { %652 = vmatmul.mubr.msk.f32.gmra.mrb[2].mxu0 %vm62_vm0, %v37_v11  ;;  %182 = vperm.xlu0 %744, %v172_v12   ;;  %v360_v26 = vld [vmem:[%s942_s5 + $0x10] sm:$0xff] }
   0xd   :  { %690 = vmatprep.mubr.msk.f32.mxu0 %vm386_vm2, %v358_v52 }
   0xe   :  { %197 = vperm.xlu1 %745, %v175_v15  }
  0x10   :  { %192 = vperm.xlu0 %744, %v174_v14  }
  0x12   :  { %207 = vperm.xlu1 %745, %v177_v17  }
  0x14   :  { %202 = vperm.xlu0 %744, %v176_v16  }
  0x16   :  { %217 = vperm.xlu1 %745, %v179_v19  }
  0x18   :  { %212 = vperm.xlu0 %744, %v178_v18  }
  0x1a   :  { %373 = vperm.xlu1 %745, %v363_v21  }
  0x1c   :  { %368 = vperm.xlu0 %744, %v362_v20  }
  0x1e   :  { %383 = vperm.xlu1 %745, %v365_v23  }
  0x20   :  { %378 = vperm.xlu0 %744, %v364_v22  }
  0x22   :  { %499 = vperm.xlu1 %745, %v491_v25   ;;  %v359_v25 = vld [vmem:[%s942_s5 + $0x8] sm:$0xff] }
  0x24   :  { %494 = vperm.xlu0 %744, %v490_v24  }
  0x81   :  { %v55_v28 = vpop.permute.xlu1 %54 }
  0x83   :  { %v45_v27 = vpop.permute.xlu0 %44 }
  0x85   :  { %v60_v35 = vpop.permute.xlu1 %59 }
  0x87   :  { %v50_v29 = vpop.permute.xlu0 %49 }
  0x89   :  { %v188_v53 = vpop.permute.xlu1 %187 }
  0x8b   :  { %v183_v54 = vpop.permute.xlu0 %182 }
  0x8d   :  { %v198_v55 = vpop.permute.xlu1 %197 }
  0x8f   :  { %v193_v57 = vpop.permute.xlu0 %192 }
  0x91   :  { %v208_v2 = vpop.permute.xlu1 %207 }
  0x93   :  { %v203_v5 = vpop.permute.xlu0 %202 }
  0x95   :  { %v218_v14 = vpop.permute.xlu1 %217 }
  0x97   :  { %v213_v17 = vpop.permute.xlu0 %212 }
  0xdb   :  { %v650_v30 = vpop.f32.mrb[0].mxu0 }
  0xdc   :  { %v147_v31 = vadd.f32 %v650_v30, %v50_v29  ;;  %v141_v32 = vpop.f32.mrb[1].mxu0  ;;  %v374_v29 = vpop.permute.xlu1 %373 }
  0xdd   :  { %v142_v33 = vadd.f32 %v141_v32, %v45_v27  ;;  %v361_v27 = vld [vmem:[%s942_s5 + $0x18] sm:$0xff]  ;;  %v369_v30 = vpop.permute.xlu0 %368 }
  0xde   :  { %v161_v34 = vmax.f32 %v147_v31, 0.0 }
  0xdf   :  { %v160_v36 = vmax.f32 %v142_v33, 0.0  ;;  %v653_v37 = vpop.f32.mrb[2].mxu0 }
  0xe0   :  { %v157_v38 = vadd.f32 %v653_v37, %v60_v35  ;;  %v151_v39 = vpop.f32.mrb[3].mxu0 }
  0xe1   :  { %v152_v40 = vadd.f32 %v151_v39, %v55_v28  ;;  %v711_v41 = vpack.c.bf16 %v161_v34, %v160_v36  ;;  %v488_v28 = vld [vmem:[%s943_s7] sm:$0xff]  ;;  %v384_v36 = vpop.permute.xlu1 %383  ;;  %v379_v39 = vpop.permute.xlu0 %378 }
  0xe2   :  { %v163_v42 = vmax.f32 %v157_v38, 0.0 }
  0xe3   :  { %v162_v43 = vmax.f32 %v152_v40, 0.0  ;;  %712 = vmatprep.subr.bf16.mxu1 %v711_v41 }
  0xe4   :  { %714 = vmatpush3.bf16.msra.mxu1 %v711_v41 }
  0xe5   :  { %v715_v44 = vpack.c.bf16 %v163_v42, %v162_v43 }
  0xe7   :  { %716 = vmatprep.subr.bf16.mxu1 %v715_v44 }
  0xe8   :  { %718 = vmatpush3.bf16.msra.mxu1 %v715_v44 }
  0xeb   :  { %663 = vmatmul.mubr.msk.f32.vlgmr.msra.gmra.mrb[0].mxu1 %vm220_vm1, %v165_v45 }
  0xec   :  { %665 = vmatprep.mubr.msk.f32.mxu1 %vm220_vm1, %v166_v46 }
  0xef   :  { %666 = vmatmul.mubr.msk.f32.gmra.mrb[2].mxu1 %vm220_vm1, %v167_v47  ;;  %v489_v47 = vld [vmem:[%s943_s7 + $0x8] sm:$0xff] }
  0xf0   :  { %668 = vmatprep.mubr.msk.f32.mxu1 %vm220_vm1, %v168_v48  ;;  %v500_v48 = vpop.permute.xlu1 %499 }
  0xf3   :  { %669 = vmatmul.mubr.msk.f32.gmra.mrb[4].mxu1 %vm220_vm1, %v169_v49 }
  0xf4   :  { %671 = vmatprep.mubr.msk.f32.mxu1 %vm220_vm1, %v170_v50  ;;  %v495_v50 = vpop.permute.xlu0 %494 }
  0xf7   :  { %672 = vmatmul.mubr.msk.f32.gmra.mrb[6].mxu1 %vm220_vm1, %v171_v51 }
  0xf8   :  { %704 = vmatprep.mubr.msk.f32.mxu1 %vm220_vm1, %v488_v28 }
 0x1be   :  { %v664_v56 = vpop.f32.mrb[0].mxu1 }
 0x1bf   :  { %v317_v58 = vadd.f32 %v664_v56, %v188_v53  ;;  %v311_v59 = vpop.f32.mrb[1].mxu1 }
 0x1c0   :  { %v312_v60 = vadd.f32 %v311_v59, %v183_v54 }
 0x1c1   :  { %v351_v61 = vmax.f32 %v317_v58, 0.0 }
 0x1c2   :  { %v350_v62 = vmax.f32 %v312_v60, 0.0  ;;  %v667_v63 = vpop.f32.mrb[2].mxu1 }
 0x1c3   :  { %v327_v0 = vadd.f32 %v667_v63, %v198_v55  ;;  %v321_v1 = vpop.f32.mrb[3].mxu1 }
 0x1c4   :  { %v719_v3 = vpack.c.bf16 %v351_v61, %v350_v62  ;;  %v322_v4 = vadd.f32 %v321_v1, %v193_v57 }
 0x1c5   :  { %v353_v6 = vmax.f32 %v327_v0, 0.0 }
 0x1c6   :  { %v352_v7 = vmax.f32 %v322_v4, 0.0  ;;  %v670_v8 = vpop.f32.mrb[4].mxu1  ;;  %720 = vmatprep.subr.bf16.mxu0 %v719_v3 }
 0x1c7   :  { %v337_v9 = vadd.f32 %v670_v8, %v208_v2  ;;  %v331_v10 = vpop.f32.mrb[5].mxu1  ;;  %722 = vmatpush3.bf16.msra.mxu0 %v719_v3 }
 0x1c8   :  { %v723_v11 = vpack.c.bf16 %v353_v6, %v352_v7  ;;  %v332_v12 = vadd.f32 %v331_v10, %v203_v5 }
 0x1c9   :  { %v355_v13 = vmax.f32 %v337_v9, 0.0 }
 0x1ca   :  { %v354_v15 = vmax.f32 %v332_v12, 0.0  ;;  %v673_v16 = vpop.f32.mrb[6].mxu1  ;;  %724 = vmatprep.subr.bf16.mxu0 %v723_v11 }
 0x1cb   :  { %v347_v18 = vadd.f32 %v673_v16, %v218_v14  ;;  %v341_v19 = vpop.f32.mrb[7].mxu1  ;;  %726 = vmatpush3.bf16.msra.mxu0 %v723_v11 }
 0x1cc   :  { %v727_v20 = vpack.c.bf16 %v355_v13, %v354_v15  ;;  %v342_v21 = vadd.f32 %v341_v19, %v213_v17 }
 0x1cd   :  { %v357_v22 = vmax.f32 %v347_v18, 0.0 }
 0x1ce   :  { %v356_v23 = vmax.f32 %v342_v21, 0.0  ;;  %728 = vmatprep.subr.bf16.mxu0 %v727_v20 }
 0x1cf   :  { %730 = vmatpush3.bf16.msra.mxu0 %v727_v20 }
 0x1d0   :  { %v731_v24 = vpack.c.bf16 %v357_v22, %v356_v23 }
 0x1d2   :  { %732 = vmatprep.subr.bf16.mxu0 %v731_v24 }
 0x1d3   :  { %734 = vmatpush3.bf16.msra.mxu0 %v731_v24 }
 0x1d6   :  { %691 = vmatmul.mubr.msk.f32.vlgmr.msra.gmra.mrb[4].mxu0 %vm386_vm2, %v359_v25 }
 0x1d7   :  { %693 = vmatprep.mubr.msk.f32.mxu0 %vm386_vm2, %v360_v26 }
 0x1da   :  { %694 = vmatmul.mubr.msk.f32.gmra.mrb[6].mxu0 %vm386_vm2, %v361_v27 }
 0x2a9   :  { %v692_v31 = vpop.f32.mrb[4].mxu0 }
 0x2aa   :  { %v471_v32 = vadd.f32 %v692_v31, %v374_v29  ;;  %v465_v33 = vpop.f32.mrb[5].mxu0 }
 0x2ab   :  { %v466_v34 = vadd.f32 %v465_v33, %v369_v30 }
 0x2ac   :  { %v485_v35 = vmax.f32 %v471_v32, 0.0 }
 0x2ad   :  { %v484_v37 = vmax.f32 %v466_v34, 0.0  ;;  %v695_v38 = vpop.f32.mrb[6].mxu0 }
 0x2ae   :  { %v481_v40 = vadd.f32 %v695_v38, %v384_v36  ;;  %v475_v41 = vpop.f32.mrb[7].mxu0 }
 0x2af   :  { %v735_v42 = vpack.c.bf16 %v485_v35, %v484_v37  ;;  %v476_v43 = vadd.f32 %v475_v41, %v379_v39 }
 0x2b0   :  { %v487_v44 = vmax.f32 %v481_v40, 0.0 }
 0x2b1   :  { %v486_v45 = vmax.f32 %v476_v43, 0.0  ;;  %736 = vmatprep.subr.bf16.mxu1 %v735_v42 }
 0x2b2   :  { %738 = vmatpush3.bf16.msra.mxu1 %v735_v42 }
 0x2b3   :  { %v739_v46 = vpack.c.bf16 %v487_v44, %v486_v45 }
 0x2b5   :  { %740 = vmatprep.subr.bf16.mxu1 %v739_v46 }
 0x2b6   :  { %742 = vmatpush3.bf16.msra.mxu1 %v739_v46 }
 0x2b9   :  { %705 = vmatmul.mubr.msk.f32.vlgmr.msra.gmra.mrb[8].mxu1 %vm220_vm1, %v489_v47 }
 0x38c   :  { %v706_v49 = vpop.f32.mrb[8].mxu1 }
 0x38d   :  { %v580_v51 = vadd.f32 %v706_v49, %v500_v48  ;;  %v574_v52 = vpop.f32.mrb[9].mxu1 }
 0x38e   :  { %v575_v53 = vadd.f32 %v574_v52, %v495_v50 }
 0x38f   :  { %585 = vst.msk [vmem:[%s944_s9 + $0x8] sm:$0xff] %vm583_vm3, %v580_v51 }
 0x390   :  { %584 = vst.msk [vmem:[%s944_s9] sm:$0xff] %vm583_vm3, %v575_v53 }

</bundles_post_ra>
